<compile_context>
chip_gen: v7x
topology: tpu7x:2x2x1
jax: 0.10.0
libtpu: 0.0.40
codegen_flags: <defaults>
</compile_context>

<pallas_src>
import jax
import jax.numpy as jnp
from jax.experimental import pallas as pl
from jax.experimental.pallas import tpu as pltpu

IN_DIM = 64
HID = 512
NUM_ACT = 340           # probs head width (PyTorch)
VALUE_COL = NUM_ACT     # value logit lives at column 340 of the fused head
HEAD_W = 384            # lane-dense padded head width (340 probs + 1 value + pad)
TILE_B_MAX = 512        # max batch rows per grid step (comfortably within VMEM)


def policy_kernel(x_ref, w1_ref, b1_ref, w2_ref, b2_ref, wh_ref, bh_ref, out_ref):
    # fc1 + ReLU (bf16 MXU matmul, f32 accumulate); x arrives as bf16
    x = x_ref[...]
    h1 = jnp.dot(x, w1_ref[...], preferred_element_type=jnp.float32) + b1_ref[...]
    h1 = jnp.maximum(h1, 0.0).astype(jnp.bfloat16)

    # fc2 + ReLU
    h2 = jnp.dot(h1, w2_ref[...], preferred_element_type=jnp.float32) + b2_ref[...]
    h2 = jnp.maximum(h2, 0.0).astype(jnp.bfloat16)

    # fused head: probs logits + value in one (tile_b,512)@(512,384) matmul
    logits = jnp.dot(h2, wh_ref[...], preferred_element_type=jnp.float32) + bh_ref[...]

    # masked softmax over the first NUM_ACT lanes only (f32)
    col = jax.lax.broadcasted_iota(jnp.int32, logits.shape, 1)
    is_prob = col < NUM_ACT
    masked = jnp.where(is_prob, logits, -jnp.inf)
    m = jnp.max(masked, axis=1, keepdims=True)
    e = jnp.exp(masked - m)                 # value/pad lanes -> exactly 0
    denom = jnp.sum(e, axis=1, keepdims=True)
    probs = e / denom                       # exact normalization (sums to 1)

    # lane-dense output slab: probs in [0,340), raw value at column 340
    out_ref[...] = jnp.where(col == VALUE_COL, logits, probs)


def policy_forward(x, params):
    w1, b1, w2, b2, wh, bh = params
    B = x.shape[0]

    # adaptive batch tile: round B up to a sublane multiple, cap at TILE_B_MAX
    tile_b = min(TILE_B_MAX, ((B + 7) // 8) * 8)
    n_tiles = pl.cdiv(B, tile_b)
    Bp = n_tiles * tile_b

    # cast input once in the wrapper (halves x DMA); pad only if ragged
    x = x.astype(jnp.bfloat16)
    if Bp != B:
        x = jnp.pad(x, ((0, Bp - B), (0, 0)))

    cost = pl.CostEstimate(
        flops=2 * Bp * (IN_DIM * HID + HID * HID + HID * HEAD_W),
        transcendentals=Bp * HEAD_W,
        bytes_accessed=(x.size * 2
                        + w1.size * 2 + w2.size * 2 + wh.size * 2
                        + b1.size * 4 + b2.size * 4 + bh.size * 4
                        + Bp * HEAD_W * 4),
    )

    out = pl.pallas_call(
        policy_kernel,
        out_shape=jax.ShapeDtypeStruct((Bp, HEAD_W), jnp.float32),
        grid=(n_tiles,),
        in_specs=[
            pl.BlockSpec((tile_b, IN_DIM), lambda i: (i, 0)),   # x tile (bf16)
            pl.BlockSpec((IN_DIM, HID), lambda i: (0, 0)),      # w1 (resident)
            pl.BlockSpec((1, HID), lambda i: (0, 0)),           # b1
            pl.BlockSpec((HID, HID), lambda i: (0, 0)),         # w2 (resident)
            pl.BlockSpec((1, HID), lambda i: (0, 0)),           # b2
            pl.BlockSpec((HID, HEAD_W), lambda i: (0, 0)),      # fused head W
            pl.BlockSpec((1, HEAD_W), lambda i: (0, 0)),        # fused head b
        ],
        out_specs=pl.BlockSpec((tile_b, HEAD_W), lambda i: (i, 0)),
        compiler_params=pltpu.CompilerParams(
            # "parallel" lets multi-TC chips (v7x megacore) shard the batch axis.
            # TODO(synk): consider pltpu.CORE_PARALLEL on v7x for explicit 2-TC split.
            dimension_semantics=("parallel",),
            # headroom for the larger batch tile on v5e's 16 MiB scoped default
            # (safe on all generations: well below v7x's 64 MiB physical VMEM)
            vmem_limit_bytes=48 * 1024 * 1024,
        ),
        cost_estimate=cost,
    )(x, w1, b1, w2, b2, wh, bh)

    pi = out[:B, :NUM_ACT]
    v = out[:B, VALUE_COL:VALUE_COL + 1]
    return pi, v


def init_params(key):
    """Deterministic init mimicking PyTorch's default Linear init
    (uniform in [-1/sqrt(fan_in), 1/sqrt(fan_in)]), stored as (in, out).
    Weights are cast to bf16; probs/value heads are packed into one
    lane-dense (512, 384) weight + (1, 384) bias."""
    def linear(key, fan_in, fan_out):
        kw, kb = jax.random.split(key)
        bound = 1.0 / jnp.sqrt(jnp.float32(fan_in))
        w = jax.random.uniform(kw, (fan_in, fan_out), jnp.float32, -bound, bound)
        b = jax.random.uniform(kb, (1, fan_out), jnp.float32, -bound, bound)
        return w, b

    k1, k2, k3, k4 = jax.random.split(key, 4)
    w1, b1 = linear(k1, IN_DIM, HID)
    w2, b2 = linear(k2, HID, HID)
    wp, bp = linear(k3, HID, NUM_ACT)
    wv, bv = linear(k4, HID, 1)

    wh = jnp.zeros((HID, HEAD_W), jnp.float32)
    wh = wh.at[:, :NUM_ACT].set(wp)
    wh = wh.at[:, VALUE_COL:VALUE_COL + 1].set(wv)
    bh = jnp.zeros((1, HEAD_W), jnp.float32)
    bh = bh.at[:, :NUM_ACT].set(bp)
    bh = bh.at[:, VALUE_COL:VALUE_COL + 1].set(bv)

    return (w1.astype(jnp.bfloat16), b1,
            w2.astype(jnp.bfloat16), b2,
            wh.astype(jnp.bfloat16), bh)


if __name__ == "__main__":
    key = jax.random.PRNGKey(0)
    kx, kp = jax.random.split(key)

    B = 8
    x = jax.random.normal(kx, (B, IN_DIM), dtype=jnp.float32)
    params = init_params(kp)

    pi, v = jax.jit(policy_forward)(x, params)
    jax.block_until_ready((pi, v))

    # reference with the same bf16 inputs/weights / f32 accumulation, in plain JAX
    w1, b1, w2, b2, wh, bh = params
    xb = x.astype(jnp.bfloat16)
    h1 = jnp.maximum(
        jnp.dot(xb, w1, preferred_element_type=jnp.float32) + b1, 0.0)
    h2 = jnp.maximum(
        jnp.dot(h1.astype(jnp.bfloat16), w2, preferred_element_type=jnp.float32) + b2, 0.0)
    head = jnp.dot(h2.astype(jnp.bfloat16), wh, preferred_element_type=jnp.float32) + bh
    pi_ref = jax.nn.softmax(head[:, :NUM_ACT], axis=1)
    v_ref = head[:, VALUE_COL:VALUE_COL + 1]

    assert pi.shape == (B, NUM_ACT) and v.shape == (B, 1)
    assert jnp.allclose(jnp.sum(pi, axis=1), 1.0, atol=1e-4)
    assert jnp.allclose(pi, pi_ref, atol=1e-3)
    assert jnp.allclose(v, v_ref, atol=1e-2, rtol=1e-2)

    print("KERNEL_OK")
</pallas_src>

<mosaic_0001>
module attributes {stable_mosaic.version = 11 : i64} {
  func.func @policy_kernel(%arg0: i32, %arg1: memref<8x64xbf16, #tpu.memory_space<vmem>>, %arg2: memref<64x512xbf16, #tpu.memory_space<vmem>>, %arg3: memref<1x512xf32, #tpu.memory_space<vmem>>, %arg4: memref<512x512xbf16, #tpu.memory_space<vmem>>, %arg5: memref<1x512xf32, #tpu.memory_space<vmem>>, %arg6: memref<512x384xbf16, #tpu.memory_space<vmem>>, %arg7: memref<1x384xf32, #tpu.memory_space<vmem>>, %arg8: memref<8x384xf32, #tpu.memory_space<vmem>>) attributes {dimension_semantics = [#tpu.dimension_semantics<parallel>], iteration_bounds = array<i64: 1>, scalar_prefetch = 0 : i64, scratch_operands = 0 : i64, tpu.core_type = #tpu.core_type<tc>, window_params = [{transform_indices = @transform_0, window_bounds = array<i64: 8, 64>}, {pipeline_mode = #tpu.pipeline_mode<synchronous>, transform_indices = @transform_1, window_bounds = array<i64: 64, 512>}, {pipeline_mode = #tpu.pipeline_mode<synchronous>, transform_indices = @transform_2, window_bounds = array<i64: 1, 512>}, {pipeline_mode = #tpu.pipeline_mode<synchronous>, transform_indices = @transform_3, window_bounds = array<i64: 512, 512>}, {pipeline_mode = #tpu.pipeline_mode<synchronous>, transform_indices = @transform_4, window_bounds = array<i64: 1, 512>}, {pipeline_mode = #tpu.pipeline_mode<synchronous>, transform_indices = @transform_5, window_bounds = array<i64: 512, 384>}, {pipeline_mode = #tpu.pipeline_mode<synchronous>, transform_indices = @transform_6, window_bounds = array<i64: 1, 384>}, {transform_indices = @transform_7, window_bounds = array<i64: 8, 384>}]} {
    %c0 = arith.constant 0 : index
    %c0_0 = arith.constant 0 : index
    %0 = vector.load %arg1[%c0, %c0_0] : memref<8x64xbf16, #tpu.memory_space<vmem>>, vector<8x64xbf16>
    %c0_1 = arith.constant 0 : index
    %c0_2 = arith.constant 0 : index
    %1 = vector.load %arg2[%c0_1, %c0_2] : memref<64x512xbf16, #tpu.memory_space<vmem>>, vector<64x512xbf16>
    %cst = arith.constant dense<0.000000e+00> : vector<8x512xf32>
    %2 = tpu.matmul %0, %1, %cst {dimension_numbers = #tpu.dot_dimension_numbers<[1], [0], [0], [1], [0, 0, 1, 1], [], []>} : vector<8x64xbf16>, vector<64x512xbf16>, vector<8x512xf32> -> vector<8x512xf32>
    %c0_3 = arith.constant 0 : index
    %c0_4 = arith.constant 0 : index
    %3 = vector.load %arg3[%c0_3, %c0_4] : memref<1x512xf32, #tpu.memory_space<vmem>>, vector<1x512xf32>
    %4 = vector.broadcast %3 : vector<1x512xf32> to vector<8x512xf32>
    %5 = arith.addf %2, %4 : vector<8x512xf32>
    %cst_5 = arith.constant 0.000000e+00 : f32
    %6 = vector.broadcast %cst_5 : f32 to vector<8x512xf32>
    %7 = arith.maximumf %5, %6 : vector<8x512xf32>
    %8 = arith.truncf %7 : vector<8x512xf32> to vector<8x512xbf16>
    %c0_6 = arith.constant 0 : index
    %c0_7 = arith.constant 0 : index
    %9 = vector.load %arg4[%c0_6, %c0_7] : memref<512x512xbf16, #tpu.memory_space<vmem>>, vector<512x512xbf16>
    %cst_8 = arith.constant dense<0.000000e+00> : vector<8x512xf32>
    %10 = tpu.matmul %8, %9, %cst_8 {dimension_numbers = #tpu.dot_dimension_numbers<[1], [0], [0], [1], [0, 0, 1, 1], [], []>} : vector<8x512xbf16>, vector<512x512xbf16>, vector<8x512xf32> -> vector<8x512xf32>
    %c0_9 = arith.constant 0 : index
    %c0_10 = arith.constant 0 : index
    %11 = vector.load %arg5[%c0_9, %c0_10] : memref<1x512xf32, #tpu.memory_space<vmem>>, vector<1x512xf32>
    %12 = vector.broadcast %11 : vector<1x512xf32> to vector<8x512xf32>
    %13 = arith.addf %10, %12 : vector<8x512xf32>
    %cst_11 = arith.constant 0.000000e+00 : f32
    %14 = vector.broadcast %cst_11 : f32 to vector<8x512xf32>
    %15 = arith.maximumf %13, %14 : vector<8x512xf32>
    %16 = arith.truncf %15 : vector<8x512xf32> to vector<8x512xbf16>
    %c0_12 = arith.constant 0 : index
    %c0_13 = arith.constant 0 : index
    %17 = vector.load %arg6[%c0_12, %c0_13] : memref<512x384xbf16, #tpu.memory_space<vmem>>, vector<512x384xbf16>
    %cst_14 = arith.constant dense<0.000000e+00> : vector<8x384xf32>
    %18 = tpu.matmul %16, %17, %cst_14 {dimension_numbers = #tpu.dot_dimension_numbers<[1], [0], [0], [1], [0, 0, 1, 1], [], []>} : vector<8x512xbf16>, vector<512x384xbf16>, vector<8x384xf32> -> vector<8x384xf32>
    %c0_15 = arith.constant 0 : index
    %c0_16 = arith.constant 0 : index
    %19 = vector.load %arg7[%c0_15, %c0_16] : memref<1x384xf32, #tpu.memory_space<vmem>>, vector<1x384xf32>
    %20 = vector.broadcast %19 : vector<1x384xf32> to vector<8x384xf32>
    %21 = arith.addf %18, %20 : vector<8x384xf32>
    %22 = tpu.iota {dimensions = array<i32: 1>} : vector<8x384xi32>
    %c340_i32 = arith.constant 340 : i32
    %23 = vector.broadcast %c340_i32 : i32 to vector<8x384xi32>
    %24 = arith.cmpi slt, %22, %23 : vector<8x384xi32>
    %cst_17 = arith.constant 0xFF800000 : f32
    %25 = vector.broadcast %cst_17 : f32 to vector<8x384xf32>
    %26 = arith.select %24, %21, %25 : vector<8x384xi1>, vector<8x384xf32>
    %cst_18 = arith.constant dense<0xFF800000> : vector<8xf32>
    %27 = vector.multi_reduction <maximumf>, %26, %cst_18 [1] : vector<8x384xf32> to vector<8xf32>
    %28 = vector.shape_cast %27 : vector<8xf32> to vector<8x1xf32>
    %29 = vector.broadcast %28 : vector<8x1xf32> to vector<8x384xf32>
    %30 = arith.subf %26, %29 : vector<8x384xf32>
    %31 = math.exp %30 : vector<8x384xf32>
    %cst_19 = arith.constant dense<0.000000e+00> : vector<8xf32>
    %32 = vector.multi_reduction <add>, %31, %cst_19 [1] : vector<8x384xf32> to vector<8xf32>
    %33 = vector.shape_cast %32 : vector<8xf32> to vector<8x1xf32>
    %34 = vector.broadcast %33 : vector<8x1xf32> to vector<8x384xf32>
    %35 = arith.divf %31, %34 : vector<8x384xf32>
    %c340_i32_20 = arith.constant 340 : i32
    %36 = vector.broadcast %c340_i32_20 : i32 to vector<8x384xi32>
    %37 = arith.cmpi eq, %22, %36 : vector<8x384xi32>
    %38 = arith.select %37, %21, %35 : vector<8x384xi1>, vector<8x384xf32>
    %c0_21 = arith.constant 0 : index
    %c0_22 = arith.constant 0 : index
    %39 = vector.load %arg8[%c0_21, %c0_22] : memref<8x384xf32, #tpu.memory_space<vmem>>, vector<8x384xf32>
    tpu.vector_store %arg8[%c0_21, %c0_22], %38 {strides = array<i32>} : memref<8x384xf32, #tpu.memory_space<vmem>>, vector<8x384xf32>,
    return
  }
  func.func @transform_0(%arg0: i32) -> (i32, i32) {
    %c0_i32 = arith.constant 0 : i32
    %c0_i32_0 = arith.constant 0 : i32
    return %arg0, %c0_i32 : i32, i32
  }
  func.func @transform_1(%arg0: i32) -> (i32, i32) {
    %c0_i32 = arith.constant 0 : i32
    %c0_i32_0 = arith.constant 0 : i32
    %c0_i32_1 = arith.constant 0 : i32
    return %c0_i32, %c0_i32_0 : i32, i32
  }
  func.func @transform_2(%arg0: i32) -> (i32, i32) {
    %c0_i32 = arith.constant 0 : i32
    %c0_i32_0 = arith.constant 0 : i32
    %c0_i32_1 = arith.constant 0 : i32
    return %c0_i32, %c0_i32_0 : i32, i32
  }
  func.func @transform_3(%arg0: i32) -> (i32, i32) {
    %c0_i32 = arith.constant 0 : i32
    %c0_i32_0 = arith.constant 0 : i32
    %c0_i32_1 = arith.constant 0 : i32
    return %c0_i32, %c0_i32_0 : i32, i32
  }
  func.func @transform_4(%arg0: i32) -> (i32, i32) {
    %c0_i32 = arith.constant 0 : i32
    %c0_i32_0 = arith.constant 0 : i32
    %c0_i32_1 = arith.constant 0 : i32
    return %c0_i32, %c0_i32_0 : i32, i32
  }
  func.func @transform_5(%arg0: i32) -> (i32, i32) {
    %c0_i32 = arith.constant 0 : i32
    %c0_i32_0 = arith.constant 0 : i32
    %c0_i32_1 = arith.constant 0 : i32
    return %c0_i32, %c0_i32_0 : i32, i32
  }
  func.func @transform_6(%arg0: i32) -> (i32, i32) {
    %c0_i32 = arith.constant 0 : i32
    %c0_i32_0 = arith.constant 0 : i32
    %c0_i32_1 = arith.constant 0 : i32
    return %c0_i32, %c0_i32_0 : i32, i32
  }
  func.func @transform_7(%arg0: i32) -> (i32, i32) {
    %c0_i32 = arith.constant 0 : i32
    %c0_i32_0 = arith.constant 0 : i32
    return %arg0, %c0_i32 : i32, i32
  }
}

</mosaic_0001>

<bundles_post_ra>
// kernel: policy_forward.1
= control target key start
LH: loop header
LB: loop body
LE: loop exit
PB: predicated region body
PF: predicated region fallthrough
CT: control target
= control target key end

     0   :  { %12 = vsyncpa [#allocation3], 0  ;;  %s3001_s0 = inlined_call_operand.vmem [shape: bf16[8,64], index: 0, kind: input, shape index: {}]   ;;  %s3002_s1 = inlined_call_operand.hbm [shape: bf16[64,512], index: 1, kind: input, shape index: {}]   ;;  %s3003_s2 = inlined_call_operand.vmem [shape: f32[1,512], index: 2, kind: input, shape index: {}]   ;;  %s3004_s3 = inlined_call_operand.hbm [shape: bf16[512,512], index: 3, kind: input, shape index: {}]   ;;  %s3005_s4 = inlined_call_operand.vmem [shape: f32[1,512], index: 4, kind: input, shape index: {}]   ;;  %s3006_s5 = inlined_call_operand.hbm [shape: bf16[512,384], index: 5, kind: input, shape index: {}]   ;;  %s3007_s6 = inlined_call_operand.vmem [shape: f32[1,384], index: 6, kind: input, shape index: {}]   ;;  %s3008_s7 = inlined_call_operand.vmem [shape: f32[8,384], index: 7, kind: output, shape index: {}]  }
   0x1   :  { %13 = vsyncpa [#allocation5], 0  ;;  %s2842_s24 = smov [#allocation4]   ;;  %s2843_s26 = smov [#allocation2]  }
   0x2   :  { %s35_s25 = sshll.u32 %s2842_s24, 4  ;;  %s21_s27 = sshll.u32 %s2843_s26, 4  ;;  %s36_s25 = int_to_ptr.vmem [resolvable:$true] %s35_s25  ;;  %s2890_s27 = int_to_ptr.vmem [resolvable:$true] %s21_s27 }
   0x3   :  { %s2772_s30 = scalar_lea.hbm %s3004_s3, 16384 }
   0x4   :  { %p2773_p0 = scmp.ne.s32.totalorder %s3004_s3, %s2772_s30  ;;  %p2776_p1 = scmp.lt.u32.totalorder %s2772_s30, %s3004_s3 }
   0x6   :  { %p2778_p2 = pnand %p2776_p1, %p2773_p0 }
   0x8   :  { %2781 = shalt.err (!%p2778_p2)
}
   0x9   :  { %s2782_s12 = scalar_lea.vmem %s36_s25, 16384  ;;  %p2787_p4 = scmp.lt.s32.totalorder %s36_s25, %s36_s25 }
   0xa   :  { %p2783_p3 = scmp.ne.s32.totalorder %s36_s25, %s2782_s12  ;;  %p2788_p5 = scmp.lt.s32.totalorder %s2782_s12, %s2782_s12 }
   0xc   :  { %p2789_p6 = por %p2788_p5, %p2787_p4 }
   0xe   :  { %p2790_p7 = pnand %p2789_p6, %p2783_p3 }
  0x10   :  { %2793 = shalt.err (!%p2790_p7)
}
  0x11   :  { %s2844_s13 = smov 256   ;;  %s2845_s14 = smov 16  }
  0x12   :  { %41 = dma.hbm_to_vmem [thread:$0]  %s3004_s3, 16384, %s36_s25, [#allocation5], %s2844_s13, %s2844_s13, %s2845_s14  }
  0x13   :  { %s2794_s19 = scalar_lea.hbm %s3002_s1, 2048 }
  0x14   :  { %p2795_p8 = scmp.ne.s32.totalorder %s3002_s1, %s2794_s19  ;;  %p2798_p9 = scmp.lt.u32.totalorder %s2794_s19, %s3002_s1 }
  0x16   :  { %p2800_p10 = pnand %p2798_p9, %p2795_p8 }
  0x18   :  { %2803 = shalt.err (!%p2800_p10)
}
  0x19   :  { %s2804_s24 = scalar_lea.vmem %s2890_s27, 2048  ;;  %p2809_p12 = scmp.lt.s32.totalorder %s2890_s27, %s2890_s27 }
  0x1a   :  { %p2805_p11 = scmp.ne.s32.totalorder %s2890_s27, %s2804_s24  ;;  %p2810_p13 = scmp.lt.s32.totalorder %s2804_s24, %s2804_s24 }
  0x1c   :  { %p2811_p0 = por %p2810_p13, %p2809_p12 }
  0x1e   :  { %p2812_p1 = pnand %p2811_p0, %p2805_p11 }
  0x20   :  { %2815 = shalt.err (!%p2812_p1)
}
  0x21   :  { %27 = dma.hbm_to_vmem [thread:$0]  %s3002_s1, 2048, %s2890_s27, [#allocation3], %s2844_s13, %s2844_s13, %s2845_s14  }
  0x22   :  { %s2846_s26 = smov [#allocation6]   ;;  %s2816_s8 = scalar_lea.hbm %s3006_s5, 12288 }
  0x23   :  { %s49_s28 = sshll.u32 %s2846_s26, 4  ;;  %p2817_p2 = scmp.ne.s32.totalorder %s3006_s5, %s2816_s8  ;;  %s50_s28 = int_to_ptr.vmem [resolvable:$true] %s49_s28 }
  0x24   :  { %p2820_p3 = scmp.lt.u32.totalorder %s2816_s8, %s3006_s5 }
  0x26   :  { %p2822_p4 = pnand %p2820_p3, %p2817_p2 }
  0x28   :  { %2825 = shalt.err (!%p2822_p4)
}
  0x29   :  { %s2826_s15 = scalar_lea.vmem %s50_s28, 12288  ;;  %p2831_p6 = scmp.lt.s32.totalorder %s50_s28, %s50_s28 }
  0x2a   :  { %p2827_p5 = scmp.ne.s32.totalorder %s50_s28, %s2826_s15  ;;  %p2832_p7 = scmp.lt.s32.totalorder %s2826_s15, %s2826_s15 }
  0x2c   :  { %p2833_p8 = por %p2832_p7, %p2831_p6 }
  0x2e   :  { %p2834_p9 = pnand %p2833_p8, %p2827_p5 }
  0x30   :  { %2837 = shalt.err (!%p2834_p9)
}
  0x31   :  { %s2847_s1 = smov 192   ;;  %s2848_s27 = smov 12  }
  0x32   :  { %55 = dma.hbm_to_vmem [thread:$0]  %s3006_s5, 12288, %s50_s28, [#allocation5], %s2847_s1, %s2847_s1, %s2848_s27  }
  0x33   :  { %2838 = dma.done.wait [#allocation3], 2048  }
  0x34   :  { %2839 = vsyncadd [#allocation3], 4294965248 }
  0x35   :  { %2840 = dma.done.wait [#allocation5], 28672  }
  0x36   :  { %2841 = vsyncadd [#allocation5], 4294938624  ;;  %v2849_v0 = vmov 0   ;;  %v2420_v1 = vld [vmem:[#allocation2 + $0x4] ss:$16 sps:$4 sm:$0xff]   ;;  %vm187_vm0 = vcmask 523264  }
  0x37   :  { %223 = vmatprep.mubr.bf16.mxu1 %v2849_v0  ;;  %v2422_v2 = vld [vmem:[#allocation2] ss:$16 sps:$4 sm:$0xff]   ;;  %191 = vmatprep.subr.bf16.mxu1 %v2420_v1  ;;  %v2423_v3 = vld [vmem:[#allocation2 + $0x24] ss:$16 sps:$4 sm:$0xff]   ;;  %v2434_v10 = vld [vmem:[#allocation2 + $0xc] ss:$16 sps:$4 sm:$0xff]  }
  0x38   :  { %192 = vmatpush1.bf16.msra.mxu1 %v2422_v2  ;;  %v2425_v4 = vld [vmem:[#allocation2 + $0x20] ss:$16 sps:$4 sm:$0xff]   ;;  %v2426_v5 = vld [vmem:[#allocation2 + $0x44] ss:$16 sps:$4 sm:$0xff]   ;;  %v68_v11 = vld [vmem:[%s3001_s0] sm:$0xf] }
  0x39   :  { %193 = vmatprep.subr.bf16.mxu1 %v2423_v3  ;;  %v2428_v6 = vld [vmem:[#allocation2 + $0x40] ss:$16 sps:$4 sm:$0xff]   ;;  %v2429_v7 = vld [vmem:[#allocation2 + $0x64] ss:$16 sps:$4 sm:$0xff]   ;;  %v2432_v14 = vld [vmem:[#allocation2 + $0x8] ss:$16 sps:$4 sm:$0xff]  }
  0x3a   :  { %v2431_v8 = vld [vmem:[#allocation2 + $0x60] ss:$16 sps:$4 sm:$0xff]   ;;  %v2444_v9 = vld [vmem:[#allocation4 + $0x4] ss:$16 sps:$4 sm:$0xff]   ;;  %v2437_v15 = vld [vmem:[#allocation2 + $0x2c] ss:$16 sps:$4 sm:$0xff]  }
  0x3b   :  { %1071 = vmatprep.subr.bf16.mxu0 %v2444_v9  ;;  %v2449_v12 = vld [vmem:[#allocation4] ss:$16 sps:$4 sm:$0xff]   ;;  %v2450_v13 = vld [vmem:[#allocation4 + $0x24] ss:$16 sps:$4 sm:$0xff]   ;;  %v2435_v18 = vld [vmem:[#allocation2 + $0x28] ss:$16 sps:$4 sm:$0xff]  }
  0x3c   :  { %194 = vmatpush1.bf16.msra.mxu1 %v2425_v4  ;;  %1072 = vmatpush1.bf16.msra.mxu0 %v2449_v12  ;;  %v2455_v16 = vld [vmem:[#allocation4 + $0x20] ss:$16 sps:$4 sm:$0xff]   ;;  %v2456_v17 = vld [vmem:[#allocation4 + $0x44] ss:$16 sps:$4 sm:$0xff]   ;;  %v2440_v19 = vld [vmem:[#allocation2 + $0x4c] ss:$16 sps:$4 sm:$0xff]  }
  0x3d   :  { %195 = vmatprep.subr.bf16.mxu1 %v2426_v5  ;;  %1073 = vmatprep.subr.bf16.mxu0 %v2450_v13  ;;  %v2461_v20 = vld [vmem:[#allocation4 + $0x40] ss:$16 sps:$4 sm:$0xff]   ;;  %v2462_v21 = vld [vmem:[#allocation4 + $0x64] ss:$16 sps:$4 sm:$0xff]   ;;  %v2438_v22 = vld [vmem:[#allocation2 + $0x48] ss:$16 sps:$4 sm:$0xff]  }
  0x3e   :  { %v2443_v23 = vld [vmem:[#allocation2 + $0x6c] ss:$16 sps:$4 sm:$0xff]   ;;  %v2467_v24 = vld [vmem:[#allocation4 + $0x60] ss:$16 sps:$4 sm:$0xff]   ;;  %v2468_v25 = vld [vmem:[#allocation4 + $0x84] ss:$16 sps:$4 sm:$0xff]  }
  0x3f   :  { %v2441_v26 = vld [vmem:[#allocation2 + $0x68] ss:$16 sps:$4 sm:$0xff]   ;;  %v2448_v27 = vld [vmem:[#allocation4 + $0xc] ss:$16 sps:$4 sm:$0xff]   ;;  %v2473_v28 = vld [vmem:[#allocation4 + $0x80] ss:$16 sps:$4 sm:$0xff]  }
  0x40   :  { %196 = vmatpush1.bf16.msra.mxu1 %v2428_v6  ;;  %1074 = vmatpush1.bf16.msra.mxu0 %v2455_v16  ;;  %v2474_v29 = vld [vmem:[#allocation4 + $0xa4] ss:$16 sps:$4 sm:$0xff]   ;;  %v2446_v30 = vld [vmem:[#allocation4 + $0x8] ss:$16 sps:$4 sm:$0xff]   ;;  %v2454_v31 = vld [vmem:[#allocation4 + $0x2c] ss:$16 sps:$4 sm:$0xff]  }
  0x41   :  { %197 = vmatprep.subr.bf16.mxu1 %v2429_v7  ;;  %1075 = vmatprep.subr.bf16.mxu0 %v2456_v17  ;;  %v2479_v32 = vld [vmem:[#allocation4 + $0xa0] ss:$16 sps:$4 sm:$0xff]   ;;  %v2480_v33 = vld [vmem:[#allocation4 + $0xc4] ss:$16 sps:$4 sm:$0xff]   ;;  %v2452_v34 = vld [vmem:[#allocation4 + $0x28] ss:$16 sps:$4 sm:$0xff]  }
  0x42   :  { %v2460_v35 = vld [vmem:[#allocation4 + $0x4c] ss:$16 sps:$4 sm:$0xff]   ;;  %v2485_v36 = vld [vmem:[#allocation4 + $0xc0] ss:$16 sps:$4 sm:$0xff]   ;;  %v2486_v37 = vld [vmem:[#allocation4 + $0xe4] ss:$16 sps:$4 sm:$0xff]  }
  0x43   :  { %v2458_v38 = vld [vmem:[#allocation4 + $0x48] ss:$16 sps:$4 sm:$0xff]   ;;  %v2466_v39 = vld [vmem:[#allocation4 + $0x6c] ss:$16 sps:$4 sm:$0xff]   ;;  %v2491_v40 = vld [vmem:[#allocation4 + $0xe0] ss:$16 sps:$4 sm:$0xff]  }
  0x44   :  { %198 = vmatpush1.bf16.msra.mxu1 %v2431_v8  ;;  %1076 = vmatpush1.bf16.msra.mxu0 %v2461_v20  ;;  %v2492_v41 = vld [vmem:[#allocation4 + $0x104] ss:$16 sps:$4 sm:$0xff]   ;;  %v2464_v42 = vld [vmem:[#allocation4 + $0x68] ss:$16 sps:$4 sm:$0xff]   ;;  %v2472_v43 = vld [vmem:[#allocation4 + $0x8c] ss:$16 sps:$4 sm:$0xff]   ;;  %v87_v20 = vlaneseq }
  0x45   :  { %232 = vmatprep.subr.bf16.mxu1 %v2434_v10  ;;  %1077 = vmatprep.subr.bf16.mxu0 %v2462_v21  ;;  %v2497_v44 = vld [vmem:[#allocation4 + $0x100] ss:$16 sps:$4 sm:$0xff]   ;;  %v2498_v45 = vld [vmem:[#allocation4 + $0x124] ss:$16 sps:$4 sm:$0xff]   ;;  %v2470_v46 = vld [vmem:[#allocation4 + $0x88] ss:$16 sps:$4 sm:$0xff]  }
  0x46   :  { %v2478_v47 = vld [vmem:[#allocation4 + $0xac] ss:$16 sps:$4 sm:$0xff]   ;;  %v2503_v48 = vld [vmem:[#allocation4 + $0x120] ss:$16 sps:$4 sm:$0xff]   ;;  %v2504_v49 = vld [vmem:[#allocation4 + $0x144] ss:$16 sps:$4 sm:$0xff]  }
  0x47   :  { %2124 = vmatmul.mubr.msk.bf16.vlgmr.msra.gmra.mrb[0].mxu1 %vm187_vm0, %v68_v11  ;;  %v2476_v50 = vld [vmem:[#allocation4 + $0xa8] ss:$16 sps:$4 sm:$0xff]   ;;  %v2484_v51 = vld [vmem:[#allocation4 + $0xcc] ss:$16 sps:$4 sm:$0xff]   ;;  %v2509_v52 = vld [vmem:[#allocation4 + $0x140] ss:$16 sps:$4 sm:$0xff]  }
  0x48   :  { %233 = vmatpush1.bf16.msra.mxu1 %v2432_v14  ;;  %264 = vmatprep.mubr.bf16.mxu1 %v2849_v0  ;;  %v2510_v53 = vld [vmem:[#allocation4 + $0x164] ss:$16 sps:$4 sm:$0xff]   ;;  %v2482_v54 = vld [vmem:[#allocation4 + $0xc8] ss:$16 sps:$4 sm:$0xff]   ;;  %v2490_v55 = vld [vmem:[#allocation4 + $0xec] ss:$16 sps:$4 sm:$0xff]  }
  0x49   :  { %234 = vmatprep.subr.bf16.mxu1 %v2437_v15  ;;  %1078 = vmatpush1.bf16.msra.mxu0 %v2467_v24  ;;  %v2515_v56 = vld [vmem:[#allocation4 + $0x160] ss:$16 sps:$4 sm:$0xff]   ;;  %v2516_v57 = vld [vmem:[#allocation4 + $0x184] ss:$16 sps:$4 sm:$0xff]   ;;  %v2488_v58 = vld [vmem:[#allocation4 + $0xe8] ss:$16 sps:$4 sm:$0xff]  }
  0x4a   :  { %1079 = vmatprep.subr.bf16.mxu0 %v2468_v25  ;;  %v2496_v59 = vld [vmem:[#allocation4 + $0x10c] ss:$16 sps:$4 sm:$0xff]   ;;  %v2521_v60 = vld [vmem:[#allocation4 + $0x180] ss:$16 sps:$4 sm:$0xff]   ;;  %v2522_v61 = vld [vmem:[#allocation4 + $0x1a4] ss:$16 sps:$4 sm:$0xff]  }
  0x4b   :  { %v2494_v62 = vld [vmem:[#allocation4 + $0x108] ss:$16 sps:$4 sm:$0xff]   ;;  %v2502_v63 = vld [vmem:[#allocation4 + $0x12c] ss:$16 sps:$4 sm:$0xff]   ;;  %v2527_v0 = vld [vmem:[#allocation4 + $0x1a0] ss:$16 sps:$4 sm:$0xff]  }
  0x4c   :  { %235 = vmatpush1.bf16.msra.mxu1 %v2435_v18  ;;  %v2500_v1 = vld [vmem:[#allocation4 + $0x128] ss:$16 sps:$4 sm:$0xff]   ;;  %v2508_v2 = vld [vmem:[#allocation4 + $0x14c] ss:$16 sps:$4 sm:$0xff]   ;;  %v2528_v10 = vld [vmem:[#allocation4 + $0x1c4] ss:$16 sps:$4 sm:$0xff]  }
  0x4d   :  { %236 = vmatprep.subr.bf16.mxu1 %v2440_v19  ;;  %1080 = vmatpush1.bf16.msra.mxu0 %v2473_v28  ;;  %v2506_v3 = vld [vmem:[#allocation4 + $0x148] ss:$16 sps:$4 sm:$0xff]   ;;  %v2514_v4 = vld [vmem:[#allocation4 + $0x16c] ss:$16 sps:$4 sm:$0xff]   ;;  %v2533_v13 = vld [vmem:[#allocation4 + $0x1c0] ss:$16 sps:$4 sm:$0xff]  }
  0x4e   :  { %1081 = vmatprep.subr.bf16.mxu0 %v2474_v29  ;;  %v2512_v5 = vld [vmem:[#allocation4 + $0x168] ss:$16 sps:$4 sm:$0xff]   ;;  %v2520_v6 = vld [vmem:[#allocation4 + $0x18c] ss:$16 sps:$4 sm:$0xff]   ;;  %v2534_v14 = vld [vmem:[#allocation4 + $0x1e4] ss:$16 sps:$4 sm:$0xff]  }
  0x4f   :  { %v2518_v7 = vld [vmem:[#allocation4 + $0x188] ss:$16 sps:$4 sm:$0xff]   ;;  %v2526_v8 = vld [vmem:[#allocation4 + $0x1ac] ss:$16 sps:$4 sm:$0xff]   ;;  %v2539_v17 = vld [vmem:[#allocation4 + $0x1e0] ss:$16 sps:$4 sm:$0xff]  }
  0x50   :  { %237 = vmatpush1.bf16.msra.mxu1 %v2438_v22  ;;  %v2524_v9 = vld [vmem:[#allocation4 + $0x1a8] ss:$16 sps:$4 sm:$0xff]   ;;  %v2538_v15 = vld [vmem:[#allocation4 + $0x1ec] ss:$16 sps:$4 sm:$0xff]   ;;  %v2542_v18 = vld [vmem:[#allocation4 + $0x204] ss:$16 sps:$4 sm:$0xff]  }
  0x51   :  { %238 = vmatprep.subr.bf16.mxu1 %v2443_v23  ;;  %1082 = vmatpush1.bf16.msra.mxu0 %v2479_v32  ;;  %v2530_v12 = vld [vmem:[#allocation4 + $0x1c8] ss:$16 sps:$4 sm:$0xff]   ;;  %v2545_v19 = vld [vmem:[#allocation4 + $0x20c] ss:$16 sps:$4 sm:$0xff]   ;;  %v2939_v21 = vshrl.u32 %v87_v20, 7 }
  0x52   :  { %1083 = vmatprep.subr.bf16.mxu0 %v2480_v33  ;;  %v2536_v16 = vld [vmem:[#allocation4 + $0x1e8] ss:$16 sps:$4 sm:$0xff]  }
  0x53   :  { %v2942_v22 = vsub.s32 0, %v2939_v21  ;;  %v2947_v23 = vld [vmem:[%s3003_s2] sm:$0xf]  ;;  %v2950_v24 = vsub.s32 1, %v2939_v21 }
  0x54   :  { %239 = vmatpush1.bf16.msra.mxu1 %v2441_v26 }
  0x55   :  { %1153 = vmatprep.subr.bf16.mxu1 %v2448_v27  ;;  %1084 = vmatpush1.bf16.msra.mxu0 %v2485_v36  ;;  %v90_v25 = vrot.slane %v2947_v23, %v2942_v22  ;;  %v94_v26 = vrot.slane %v2947_v23, %v2950_v24  ;;  %v2540_v36 = vld [vmem:[#allocation4 + $0x200] ss:$16 sps:$4 sm:$0xff]  }
  0x56   :  { %1085 = vmatprep.subr.bf16.mxu0 %v2486_v37  ;;  %v2543_v37 = vld [vmem:[#allocation4 + $0x208] ss:$16 sps:$4 sm:$0xff]  }
  0x57   :  { %2125 = vmatmul.mubr.msk.bf16.vlgmr.msra.gmra.mrb[4].mxu1 %vm187_vm0, %v68_v11  ;;  %v2532_v11 = vld [vmem:[#allocation4 + $0x1cc] ss:$16 sps:$4 sm:$0xff]  }
  0x58   :  { %1154 = vmatpush1.bf16.msra.mxu1 %v2446_v30 }
  0x59   :  { %1155 = vmatprep.subr.bf16.mxu1 %v2454_v31  ;;  %1086 = vmatpush1.bf16.msra.mxu0 %v2491_v40  ;;  %v2551_v40 = vld [vmem:[#allocation4 + $0x22c] ss:$16 sps:$4 sm:$0xff]  }
  0x5a   :  { %1087 = vmatprep.subr.bf16.mxu0 %v2492_v41  ;;  %v2546_v41 = vld [vmem:[#allocation4 + $0x220] ss:$16 sps:$4 sm:$0xff]  }
  0x5c   :  { %1156 = vmatpush1.bf16.msra.mxu1 %v2452_v34 }
  0x5d   :  { %1157 = vmatprep.subr.bf16.mxu1 %v2460_v35  ;;  %1088 = vmatpush1.bf16.msra.mxu0 %v2497_v44  ;;  %v2554_v44 = vld [vmem:[#allocation4 + $0x244] ss:$16 sps:$4 sm:$0xff]  }
  0x5e   :  { %1089 = vmatprep.subr.bf16.mxu0 %v2498_v45  ;;  %v2557_v45 = vld [vmem:[#allocation4 + $0x24c] ss:$16 sps:$4 sm:$0xff]  }
  0x60   :  { %1158 = vmatpush1.bf16.msra.mxu1 %v2458_v38 }
  0x61   :  { %1159 = vmatprep.subr.bf16.mxu1 %v2466_v39  ;;  %1090 = vmatpush1.bf16.msra.mxu0 %v2503_v48  ;;  %v2548_v39 = vld [vmem:[#allocation4 + $0x224] ss:$16 sps:$4 sm:$0xff]  }
  0x62   :  { %1091 = vmatprep.subr.bf16.mxu0 %v2504_v49  ;;  %v2560_v49 = vld [vmem:[#allocation4 + $0x264] ss:$16 sps:$4 sm:$0xff]  }
  0x64   :  { %1160 = vmatpush1.bf16.msra.mxu1 %v2464_v42  ;;  %v2549_v42 = vld [vmem:[#allocation4 + $0x228] ss:$16 sps:$4 sm:$0xff]  }
  0x65   :  { %1161 = vmatprep.subr.bf16.mxu1 %v2472_v43  ;;  %1092 = vmatpush1.bf16.msra.mxu0 %v2509_v52  ;;  %v101_v43 = vsub.s32 3, %v2939_v21 }
  0x66   :  { %1093 = vmatprep.subr.bf16.mxu0 %v2510_v53  ;;  %v2558_v53 = vld [vmem:[#allocation4 + $0x260] ss:$16 sps:$4 sm:$0xff]  }
  0x67   :  { %v102_v48 = vrot.slane %v2947_v23, %v101_v43 }
  0x68   :  { %1162 = vmatpush1.bf16.msra.mxu1 %v2470_v46  ;;  %v2552_v46 = vld [vmem:[#allocation4 + $0x240] ss:$16 sps:$4 sm:$0xff]  }
  0x69   :  { %1163 = vmatprep.subr.bf16.mxu1 %v2478_v47  ;;  %1094 = vmatpush1.bf16.msra.mxu0 %v2515_v56  ;;  %v2555_v47 = vld [vmem:[#allocation4 + $0x248] ss:$16 sps:$4 sm:$0xff]  }
  0x6a   :  { %1095 = vmatprep.subr.bf16.mxu0 %v2516_v57  ;;  %v2566_v57 = vld [vmem:[#allocation4 + $0x284] ss:$16 sps:$4 sm:$0xff]  }
  0x6c   :  { %1164 = vmatpush1.bf16.msra.mxu1 %v2476_v50  ;;  %v2563_v50 = vld [vmem:[#allocation4 + $0x26c] ss:$16 sps:$4 sm:$0xff]  }
  0x6d   :  { %1165 = vmatprep.subr.bf16.mxu1 %v2484_v51  ;;  %1096 = vmatpush1.bf16.msra.mxu0 %v2521_v60 }
  0x6e   :  { %1097 = vmatprep.subr.bf16.mxu0 %v2522_v61  ;;  %v2564_v61 = vld [vmem:[#allocation4 + $0x280] ss:$16 sps:$4 sm:$0xff]  }
  0x70   :  { %1166 = vmatpush1.bf16.msra.mxu1 %v2482_v54  ;;  %v2561_v54 = vld [vmem:[#allocation4 + $0x268] ss:$16 sps:$4 sm:$0xff]  }
  0x71   :  { %1167 = vmatprep.subr.bf16.mxu1 %v2490_v55  ;;  %1098 = vmatpush1.bf16.msra.mxu0 %v2527_v0  ;;  %v2572_v0 = vld [vmem:[#allocation4 + $0x2a4] ss:$16 sps:$4 sm:$0xff]  }
  0x72   :  { %1099 = vmatprep.subr.bf16.mxu0 %v2528_v10  ;;  %v2582_v10 = vld [vmem:[#allocation4 + $0x2e0] ss:$16 sps:$4 sm:$0xff]  }
  0x74   :  { %1168 = vmatpush1.bf16.msra.mxu1 %v2488_v58  ;;  %v2569_v58 = vld [vmem:[#allocation4 + $0x28c] ss:$16 sps:$4 sm:$0xff]  }
  0x75   :  { %1169 = vmatprep.subr.bf16.mxu1 %v2496_v59  ;;  %1100 = vmatpush1.bf16.msra.mxu0 %v2533_v13  ;;  %v2593_v13 = vld [vmem:[#allocation4 + $0x30c] ss:$16 sps:$4 sm:$0xff]  }
  0x76   :  { %1101 = vmatprep.subr.bf16.mxu0 %v2534_v14  ;;  %v2588_v14 = vld [vmem:[#allocation4 + $0x300] ss:$16 sps:$4 sm:$0xff]  }
  0x78   :  { %1170 = vmatpush1.bf16.msra.mxu1 %v2494_v62  ;;  %v2567_v62 = vld [vmem:[#allocation4 + $0x288] ss:$16 sps:$4 sm:$0xff]  }
  0x79   :  { %1171 = vmatprep.subr.bf16.mxu1 %v2502_v63  ;;  %1102 = vmatpush1.bf16.msra.mxu0 %v2539_v17  ;;  %v2599_v17 = vld [vmem:[#allocation4 + $0x32c] ss:$16 sps:$4 sm:$0xff]  }
  0x7a   :  { %1112 = vmatprep.subr.bf16.mxu0 %v2542_v18  ;;  %v2594_v18 = vld [vmem:[#allocation4 + $0x320] ss:$16 sps:$4 sm:$0xff]  }
  0x7c   :  { %1172 = vmatpush1.bf16.msra.mxu1 %v2500_v1  ;;  %v2575_v1 = vld [vmem:[#allocation4 + $0x2ac] ss:$16 sps:$4 sm:$0xff]  }
  0x7d   :  { %1173 = vmatprep.subr.bf16.mxu1 %v2508_v2  ;;  %v2570_v2 = vld [vmem:[#allocation4 + $0x2a0] ss:$16 sps:$4 sm:$0xff]  }
  0x80   :  { %1174 = vmatpush1.bf16.msra.mxu1 %v2506_v3  ;;  %v2573_v3 = vld [vmem:[#allocation4 + $0x2a8] ss:$16 sps:$4 sm:$0xff]  }
  0x81   :  { %1175 = vmatprep.subr.bf16.mxu1 %v2514_v4  ;;  %v2578_v4 = vld [vmem:[#allocation4 + $0x2c4] ss:$16 sps:$4 sm:$0xff]  }
  0x84   :  { %1176 = vmatpush1.bf16.msra.mxu1 %v2512_v5  ;;  %v2581_v5 = vld [vmem:[#allocation4 + $0x2cc] ss:$16 sps:$4 sm:$0xff]  }
  0x85   :  { %1177 = vmatprep.subr.bf16.mxu1 %v2520_v6  ;;  %v2576_v6 = vld [vmem:[#allocation4 + $0x2c0] ss:$16 sps:$4 sm:$0xff]  }
  0x88   :  { %1178 = vmatpush1.bf16.msra.mxu1 %v2518_v7  ;;  %v2579_v7 = vld [vmem:[#allocation4 + $0x2c8] ss:$16 sps:$4 sm:$0xff]  }
  0x89   :  { %1179 = vmatprep.subr.bf16.mxu1 %v2526_v8  ;;  %v2584_v8 = vld [vmem:[#allocation4 + $0x2e4] ss:$16 sps:$4 sm:$0xff]  }
  0x8c   :  { %1180 = vmatpush1.bf16.msra.mxu1 %v2524_v9  ;;  %v2587_v9 = vld [vmem:[#allocation4 + $0x2ec] ss:$16 sps:$4 sm:$0xff]  }
  0x8d   :  { %1181 = vmatprep.subr.bf16.mxu1 %v2532_v11  ;;  %v2585_v11 = vld [vmem:[#allocation4 + $0x2e8] ss:$16 sps:$4 sm:$0xff]  }
  0x90   :  { %1182 = vmatpush1.bf16.msra.mxu1 %v2530_v12  ;;  %v2590_v12 = vld [vmem:[#allocation4 + $0x304] ss:$16 sps:$4 sm:$0xff]  }
  0x91   :  { %1183 = vmatprep.subr.bf16.mxu1 %v2538_v15  ;;  %v2591_v15 = vld [vmem:[#allocation4 + $0x308] ss:$16 sps:$4 sm:$0xff]  }
  0x94   :  { %1184 = vmatpush1.bf16.msra.mxu1 %v2536_v16  ;;  %v2596_v16 = vld [vmem:[#allocation4 + $0x324] ss:$16 sps:$4 sm:$0xff]  }
  0x95   :  { %1194 = vmatprep.subr.bf16.mxu1 %v2545_v19  ;;  %v2597_v19 = vld [vmem:[#allocation4 + $0x328] ss:$16 sps:$4 sm:$0xff]  }
 0x11a   :  { %v225_v27 = vpop.f32.mrb[0].mxu1 }
 0x11b   :  { %v226_v28 = vadd.f32 %v225_v27, %v90_v25  ;;  %v227_v29 = vpop.f32.mrb[1].mxu1  ;;  %v2602_v25 = vld [vmem:[#allocation4 + $0x344] ss:$16 sps:$4 sm:$0xff]   ;;  %v2600_v27 = vld [vmem:[#allocation4 + $0x340] ss:$16 sps:$4 sm:$0xff]  }
 0x11c   :  { %v228_v30 = vadd.f32 %v227_v29, %v94_v26  ;;  %v229_v31 = vpop.f32.mrb[2].mxu1  ;;  %v2605_v26 = vld [vmem:[#allocation4 + $0x34c] ss:$16 sps:$4 sm:$0xff]   ;;  %v2608_v29 = vld [vmem:[#allocation4 + $0x364] ss:$16 sps:$4 sm:$0xff]  }
 0x11d   :  { %v273_v32 = vmax.f32 %v226_v28, 0.0  ;;  %v230_v33 = vpop.f32.mrb[3].mxu1  ;;  %v2603_v28 = vld [vmem:[#allocation4 + $0x348] ss:$16 sps:$4 sm:$0xff]   ;;  %v2606_v31 = vld [vmem:[#allocation4 + $0x360] ss:$16 sps:$4 sm:$0xff]  }
 0x11e   :  { %v274_v34 = vmax.f32 %v228_v30, 0.0  ;;  %v2611_v30 = vld [vmem:[#allocation4 + $0x36c] ss:$16 sps:$4 sm:$0xff]   ;;  %v2614_v33 = vld [vmem:[#allocation4 + $0x384] ss:$16 sps:$4 sm:$0xff]  }
 0x11f   :  { %v277_v38 = vpack.c.bf16 %v273_v32, %v273_v32  ;;  %v2609_v32 = vld [vmem:[#allocation4 + $0x368] ss:$16 sps:$4 sm:$0xff]  }
 0x120   :  { %v278_v35 = vpack.c.bf16 %v274_v34, %v274_v34  ;;  %v2617_v34 = vld [vmem:[#allocation4 + $0x38c] ss:$16 sps:$4 sm:$0xff]  }
 0x122   :  { %1103 = vmatprep.mubr.bf16.mxu0 %v278_v35  ;;  %1185 = vmatprep.mubr.bf16.mxu1 %v278_v35  ;;  %v2612_v35 = vld [vmem:[#allocation4 + $0x380] ss:$16 sps:$4 sm:$0xff]  }
 0x123   :  { %1104 = vmatmul.mubr.bf16.vlgmr.msra.gmra.mrb[0].mxu0 %v277_v38  ;;  %1186 = vmatmul.mubr.bf16.vlgmr.msra.gmra.mrb[8].mxu1 %v277_v38  ;;  %v2620_v38 = vld [vmem:[#allocation4 + $0x3a4] ss:$16 sps:$4 sm:$0xff]  }
 0x124   :  { %1113 = vmatpush1.bf16.msra.mxu0 %v2540_v36  ;;  %1195 = vmatpush1.bf16.msra.mxu1 %v2543_v37  ;;  %v2615_v36 = vld [vmem:[#allocation4 + $0x388] ss:$16 sps:$4 sm:$0xff]   ;;  %v2963_v37 = vsub.s32 2, %v2939_v21 }
 0x125   :  { %1114 = vmatprep.subr.bf16.mxu0 %v2548_v39  ;;  %1196 = vmatprep.subr.bf16.mxu1 %v2551_v40  ;;  %v2623_v39 = vld [vmem:[#allocation4 + $0x3ac] ss:$16 sps:$4 sm:$0xff]   ;;  %v2618_v40 = vld [vmem:[#allocation4 + $0x3a0] ss:$16 sps:$4 sm:$0xff]   ;;  %v2704_v21 = vld [vmem:[#allocation6 + $0x188] ss:$12 sps:$4 sm:$0xff]  }
 0x128   :  { %1115 = vmatpush1.bf16.msra.mxu0 %v2546_v41  ;;  %1197 = vmatpush1.bf16.msra.mxu1 %v2549_v42  ;;  %v2621_v41 = vld [vmem:[#allocation4 + $0x3a8] ss:$16 sps:$4 sm:$0xff]   ;;  %v98_v42 = vrot.slane %v2947_v23, %v2963_v37  ;;  %v2638_v23 = vld [vmem:[#allocation6 + $0x4] ss:$12 sps:$4 sm:$0xff]  }
 0x129   :  { %1116 = vmatprep.subr.bf16.mxu0 %v2554_v44  ;;  %1198 = vmatprep.subr.bf16.mxu1 %v2557_v45  ;;  %v2626_v44 = vld [vmem:[#allocation4 + $0x3c4] ss:$16 sps:$4 sm:$0xff]   ;;  %v2629_v45 = vld [vmem:[#allocation4 + $0x3cc] ss:$16 sps:$4 sm:$0xff]  }
 0x12a   :  { %v2960_v51 = vpop.f32.mrb[4].mxu1 }
 0x12b   :  { %v268_v52 = vpop.f32.mrb[5].mxu1 }
 0x12c   :  { %1117 = vmatpush1.bf16.msra.mxu0 %v2552_v46  ;;  %1199 = vmatpush1.bf16.msra.mxu1 %v2555_v47  ;;  %v269_v55 = vadd.f32 %v268_v52, %v102_v48  ;;  %v270_v56 = vpop.f32.mrb[6].mxu1  ;;  %v2624_v46 = vld [vmem:[#allocation4 + $0x3c0] ss:$16 sps:$4 sm:$0xff]   ;;  %v2627_v47 = vld [vmem:[#allocation4 + $0x3c8] ss:$16 sps:$4 sm:$0xff]   ;;  %v267_v48 = vadd.f32 %v2960_v51, %v98_v42 }
 0x12d   :  { %1118 = vmatprep.subr.bf16.mxu0 %v2560_v49  ;;  %1200 = vmatprep.subr.bf16.mxu1 %v2563_v50  ;;  %v271_v59 = vpop.f32.mrb[7].mxu1  ;;  %v2632_v49 = vld [vmem:[#allocation4 + $0x3e4] ss:$16 sps:$4 sm:$0xff]   ;;  %v2635_v50 = vld [vmem:[#allocation4 + $0x3ec] ss:$16 sps:$4 sm:$0xff]  }
 0x12e   :  { %v276_v60 = vmax.f32 %v269_v55, 0.0  ;;  %v2630_v52 = vld [vmem:[#allocation4 + $0x3e0] ss:$16 sps:$4 sm:$0xff]   ;;  %v2663_v55 = vld [vmem:[#allocation6 + $0xc8] ss:$12 sps:$4 sm:$0xff]  }
 0x12f   :  { %v2636_v56 = vld [vmem:[#allocation6] ss:$12 sps:$4 sm:$0xff]   ;;  %v2641_v51 = vld [vmem:[#allocation6 + $0x1c] ss:$12 sps:$4 sm:$0xff]  }
 0x130   :  { %1119 = vmatpush1.bf16.msra.mxu0 %v2558_v53  ;;  %1201 = vmatpush1.bf16.msra.mxu1 %v2561_v54  ;;  %v280_v63 = vpack.c.bf16 %v276_v60, %v276_v60  ;;  %v2633_v53 = vld [vmem:[#allocation4 + $0x3e8] ss:$16 sps:$4 sm:$0xff]   ;;  %v275_v54 = vmax.f32 %v267_v48, 0.0  ;;  %v2668_v59 = vld [vmem:[#allocation6 + $0xe0] ss:$12 sps:$4 sm:$0xff]  }
 0x131   :  { %1120 = vmatprep.subr.bf16.mxu0 %v2566_v57  ;;  %1202 = vmatprep.subr.bf16.mxu1 %v2569_v58  ;;  %v2664_v57 = vld [vmem:[#allocation6 + $0x8] ss:$12 sps:$4 sm:$0xff]   ;;  %v2639_v60 = vld [vmem:[#allocation6 + $0x18] ss:$12 sps:$4 sm:$0xff]  }
 0x132   :  { %1144 = vmatprep.mubr.bf16.mxu0 %v280_v63  ;;  %1226 = vmatprep.mubr.bf16.mxu1 %v280_v63  ;;  %v279_v58 = vpack.c.bf16 %v275_v54, %v275_v54  ;;  %v2673_v63 = vld [vmem:[#allocation6 + $0xf8] ss:$12 sps:$4 sm:$0xff]   ;;  %v2695_v42 = vld [vmem:[#allocation6 + $0x168] ss:$12 sps:$4 sm:$0xff]  }
 0x134   :  { %1121 = vmatpush1.bf16.msra.mxu0 %v2564_v61  ;;  %1203 = vmatpush1.bf16.msra.mxu1 %v2567_v62  ;;  %v2669_v61 = vld [vmem:[#allocation6 + $0x20] ss:$12 sps:$4 sm:$0xff]  }
 0x135   :  { %1122 = vmatprep.subr.bf16.mxu0 %v2572_v0  ;;  %1204 = vmatprep.subr.bf16.mxu1 %v2575_v1  ;;  %v2644_v62 = vld [vmem:[#allocation6 + $0x34] ss:$12 sps:$4 sm:$0xff]   ;;  %v2642_v0 = vld [vmem:[#allocation6 + $0x30] ss:$12 sps:$4 sm:$0xff]   ;;  %v2674_v1 = vld [vmem:[#allocation6 + $0x38] ss:$12 sps:$4 sm:$0xff]  }
 0x138   :  { %1123 = vmatpush1.bf16.msra.mxu0 %v2570_v2  ;;  %1205 = vmatpush1.bf16.msra.mxu1 %v2573_v3  ;;  %v2647_v2 = vld [vmem:[#allocation6 + $0x4c] ss:$12 sps:$4 sm:$0xff]   ;;  %v2678_v3 = vld [vmem:[#allocation6 + $0x110] ss:$12 sps:$4 sm:$0xff]  }
 0x139   :  { %1124 = vmatprep.subr.bf16.mxu0 %v2578_v4  ;;  %1206 = vmatprep.subr.bf16.mxu1 %v2581_v5  ;;  %v2645_v4 = vld [vmem:[#allocation6 + $0x48] ss:$12 sps:$4 sm:$0xff]   ;;  %v2679_v5 = vld [vmem:[#allocation6 + $0x50] ss:$12 sps:$4 sm:$0xff]  }
 0x13c   :  { %1125 = vmatpush1.bf16.msra.mxu0 %v2576_v6  ;;  %1207 = vmatpush1.bf16.msra.mxu1 %v2579_v7  ;;  %v2650_v6 = vld [vmem:[#allocation6 + $0x64] ss:$12 sps:$4 sm:$0xff]   ;;  %v2683_v7 = vld [vmem:[#allocation6 + $0x128] ss:$12 sps:$4 sm:$0xff]  }
 0x13d   :  { %1126 = vmatprep.subr.bf16.mxu0 %v2584_v8  ;;  %1208 = vmatprep.subr.bf16.mxu1 %v2587_v9  ;;  %v2648_v8 = vld [vmem:[#allocation6 + $0x60] ss:$12 sps:$4 sm:$0xff]   ;;  %v2684_v9 = vld [vmem:[#allocation6 + $0x68] ss:$12 sps:$4 sm:$0xff]  }
 0x140   :  { %1127 = vmatpush1.bf16.msra.mxu0 %v2582_v10  ;;  %1209 = vmatpush1.bf16.msra.mxu1 %v2585_v11  ;;  %v2653_v10 = vld [vmem:[#allocation6 + $0x7c] ss:$12 sps:$4 sm:$0xff]   ;;  %v2688_v11 = vld [vmem:[#allocation6 + $0x140] ss:$12 sps:$4 sm:$0xff]  }
 0x141   :  { %1128 = vmatprep.subr.bf16.mxu0 %v2590_v12  ;;  %1210 = vmatprep.subr.bf16.mxu1 %v2593_v13  ;;  %v2651_v12 = vld [vmem:[#allocation6 + $0x78] ss:$12 sps:$4 sm:$0xff]   ;;  %v2689_v13 = vld [vmem:[#allocation6 + $0x80] ss:$12 sps:$4 sm:$0xff]  }
 0x144   :  { %1129 = vmatpush1.bf16.msra.mxu0 %v2588_v14  ;;  %1211 = vmatpush1.bf16.msra.mxu1 %v2591_v15  ;;  %v2656_v14 = vld [vmem:[#allocation6 + $0x94] ss:$12 sps:$4 sm:$0xff]   ;;  %v2654_v15 = vld [vmem:[#allocation6 + $0x90] ss:$12 sps:$4 sm:$0xff]  }
 0x145   :  { %1130 = vmatprep.subr.bf16.mxu0 %v2596_v16  ;;  %1212 = vmatprep.subr.bf16.mxu1 %v2599_v17  ;;  %v2659_v16 = vld [vmem:[#allocation6 + $0xac] ss:$12 sps:$4 sm:$0xff]   ;;  %v2657_v17 = vld [vmem:[#allocation6 + $0xa8] ss:$12 sps:$4 sm:$0xff]  }
 0x148   :  { %1131 = vmatpush1.bf16.msra.mxu0 %v2594_v18  ;;  %1213 = vmatpush1.bf16.msra.mxu1 %v2597_v19  ;;  %v2662_v18 = vld [vmem:[#allocation6 + $0xc4] ss:$12 sps:$4 sm:$0xff]   ;;  %v2660_v19 = vld [vmem:[#allocation6 + $0xc0] ss:$12 sps:$4 sm:$0xff]  }
 0x149   :  { %1132 = vmatprep.subr.bf16.mxu0 %v2602_v25  ;;  %1214 = vmatprep.subr.bf16.mxu1 %v2605_v26  ;;  %v2667_v25 = vld [vmem:[#allocation6 + $0xdc] ss:$12 sps:$4 sm:$0xff]   ;;  %v2665_v26 = vld [vmem:[#allocation6 + $0xd8] ss:$12 sps:$4 sm:$0xff]  }
 0x14c   :  { %1133 = vmatpush1.bf16.msra.mxu0 %v2600_v27  ;;  %1215 = vmatpush1.bf16.msra.mxu1 %v2603_v28  ;;  %v2672_v27 = vld [vmem:[#allocation6 + $0xf4] ss:$12 sps:$4 sm:$0xff]   ;;  %v2670_v28 = vld [vmem:[#allocation6 + $0xf0] ss:$12 sps:$4 sm:$0xff]  }
 0x14d   :  { %1134 = vmatprep.subr.bf16.mxu0 %v2608_v29  ;;  %1216 = vmatprep.subr.bf16.mxu1 %v2611_v30  ;;  %v2677_v29 = vld [vmem:[#allocation6 + $0x10c] ss:$12 sps:$4 sm:$0xff]   ;;  %v2675_v30 = vld [vmem:[#allocation6 + $0x108] ss:$12 sps:$4 sm:$0xff]  }
 0x150   :  { %1135 = vmatpush1.bf16.msra.mxu0 %v2606_v31  ;;  %1217 = vmatpush1.bf16.msra.mxu1 %v2609_v32  ;;  %v2682_v31 = vld [vmem:[#allocation6 + $0x124] ss:$12 sps:$4 sm:$0xff]   ;;  %v2680_v32 = vld [vmem:[#allocation6 + $0x120] ss:$12 sps:$4 sm:$0xff]  }
 0x151   :  { %1136 = vmatprep.subr.bf16.mxu0 %v2614_v33  ;;  %1218 = vmatprep.subr.bf16.mxu1 %v2617_v34  ;;  %v2687_v33 = vld [vmem:[#allocation6 + $0x13c] ss:$12 sps:$4 sm:$0xff]   ;;  %v2685_v34 = vld [vmem:[#allocation6 + $0x138] ss:$12 sps:$4 sm:$0xff]  }
 0x154   :  { %1137 = vmatpush1.bf16.msra.mxu0 %v2612_v35  ;;  %1219 = vmatpush1.bf16.msra.mxu1 %v2615_v36  ;;  %v2692_v35 = vld [vmem:[#allocation6 + $0x154] ss:$12 sps:$4 sm:$0xff]   ;;  %v2693_v36 = vld [vmem:[#allocation6 + $0x158] ss:$12 sps:$4 sm:$0xff]  }
 0x155   :  { %1138 = vmatprep.subr.bf16.mxu0 %v2620_v38  ;;  %1220 = vmatprep.subr.bf16.mxu1 %v2623_v39  ;;  %v2690_v38 = vld [vmem:[#allocation6 + $0x150] ss:$12 sps:$4 sm:$0xff]   ;;  %v2694_v39 = vld [vmem:[#allocation6 + $0x98] ss:$12 sps:$4 sm:$0xff]  }
 0x158   :  { %1139 = vmatpush1.bf16.msra.mxu0 %v2618_v40  ;;  %1221 = vmatpush1.bf16.msra.mxu1 %v2621_v41  ;;  %v2697_v40 = vld [vmem:[#allocation6 + $0x16c] ss:$12 sps:$4 sm:$0xff]   ;;  %v2698_v41 = vld [vmem:[#allocation6 + $0x170] ss:$12 sps:$4 sm:$0xff]  }
 0x159   :  { %1140 = vmatprep.subr.bf16.mxu0 %v2626_v44  ;;  %1222 = vmatprep.subr.bf16.mxu1 %v2629_v45  ;;  %v2699_v44 = vld [vmem:[#allocation6 + $0xb0] ss:$12 sps:$4 sm:$0xff]  }
 0x15a   :  { %v2702_v45 = vld [vmem:[#allocation6 + $0x184] ss:$12 sps:$4 sm:$0xff]  }
 0x15c   :  { %1141 = vmatpush1.bf16.msra.mxu0 %v2624_v46  ;;  %1223 = vmatpush1.bf16.msra.mxu1 %v2627_v47  ;;  %v2703_v46 = vld [vmem:[#allocation6 + $0x248] ss:$12 sps:$4 sm:$0xff]  }
 0x15d   :  { %1142 = vmatprep.subr.bf16.mxu0 %v2632_v49  ;;  %1224 = vmatprep.subr.bf16.mxu1 %v2635_v50  ;;  %v2971_v47 = vld [vmem:[%s3005_s4] sm:$0xf] }
 0x15e   :  { %v414_v48 = vrot.slane %v2971_v47, %v2942_v22  ;;  %v418_v49 = vrot.slane %v2971_v47, %v2950_v24  ;;  %v426_v50 = vrot.slane %v2971_v47, %v101_v43  ;;  %v2707_v43 = vld [vmem:[#allocation6 + $0x19c] ss:$12 sps:$4 sm:$0xff]  }
 0x160   :  { %1143 = vmatpush1.bf16.msra.mxu0 %v2630_v52  ;;  %1225 = vmatpush1.bf16.msra.mxu1 %v2633_v53 }
 0x161   :  { %1900 = vmatprep.subr.bf16.mxu0 %v2638_v23  ;;  %2350 = vmatprep.subr.bf16.mxu1 %v2663_v55 }
 0x163   :  { %1145 = vmatmul.mubr.bf16.vlgmr.msra.gmra.mrb[0].mxu0 %v279_v58  ;;  %1227 = vmatmul.mubr.bf16.vlgmr.msra.gmra.mrb[8].mxu1 %v279_v58 }
 0x164   :  { %1901 = vmatpush1.bf16.msra.mxu0 %v2636_v56  ;;  %2351 = vmatpush3.bf16.msra.mxu1 %v2664_v57 }
 0x165   :  { %1902 = vmatprep.subr.bf16.mxu0 %v2641_v51  ;;  %2352 = vmatprep.subr.bf16.mxu1 %v2668_v59 }
 0x168   :  { %1903 = vmatpush1.bf16.msra.mxu0 %v2639_v60  ;;  %2353 = vmatpush3.bf16.msra.mxu1 %v2669_v61 }
 0x169   :  { %1904 = vmatprep.subr.bf16.mxu0 %v2644_v62  ;;  %2354 = vmatprep.subr.bf16.mxu1 %v2673_v63 }
 0x16c   :  { %1905 = vmatpush1.bf16.msra.mxu0 %v2642_v0  ;;  %2355 = vmatpush3.bf16.msra.mxu1 %v2674_v1  ;;  %v2700_v1 = vld [vmem:[#allocation6 + $0x180] ss:$12 sps:$4 sm:$0xff]  }
 0x16d   :  { %1906 = vmatprep.subr.bf16.mxu0 %v2647_v2  ;;  %2356 = vmatprep.subr.bf16.mxu1 %v2678_v3  ;;  %v2708_v3 = vld [vmem:[#allocation6 + $0x260] ss:$12 sps:$4 sm:$0xff]  }
 0x170   :  { %1907 = vmatpush1.bf16.msra.mxu0 %v2645_v4  ;;  %2357 = vmatpush3.bf16.msra.mxu1 %v2679_v5  ;;  %v2705_v5 = vld [vmem:[#allocation6 + $0x198] ss:$12 sps:$4 sm:$0xff]  }
 0x171   :  { %1908 = vmatprep.subr.bf16.mxu0 %v2650_v6  ;;  %2358 = vmatprep.subr.bf16.mxu1 %v2683_v7  ;;  %v2709_v6 = vld [vmem:[#allocation6 + $0x1a0] ss:$12 sps:$4 sm:$0xff]  }
 0x172   :  { %v2712_v7 = vld [vmem:[#allocation6 + $0x1b4] ss:$12 sps:$4 sm:$0xff]  }
 0x174   :  { %1909 = vmatpush1.bf16.msra.mxu0 %v2648_v8  ;;  %2359 = vmatpush3.bf16.msra.mxu1 %v2684_v9  ;;  %v2713_v8 = vld [vmem:[#allocation6 + $0x278] ss:$12 sps:$4 sm:$0xff]   ;;  %v2710_v9 = vld [vmem:[#allocation6 + $0x1b0] ss:$12 sps:$4 sm:$0xff]  }
 0x175   :  { %1910 = vmatprep.subr.bf16.mxu0 %v2653_v10  ;;  %2360 = vmatprep.subr.bf16.mxu1 %v2688_v11  ;;  %v2714_v10 = vld [vmem:[#allocation6 + $0x1b8] ss:$12 sps:$4 sm:$0xff]  }
 0x176   :  { %v2717_v11 = vld [vmem:[#allocation6 + $0x1cc] ss:$12 sps:$4 sm:$0xff]  }
 0x178   :  { %1911 = vmatpush1.bf16.msra.mxu0 %v2651_v12  ;;  %2361 = vmatpush3.bf16.msra.mxu1 %v2689_v13  ;;  %v2718_v12 = vld [vmem:[#allocation6 + $0x290] ss:$12 sps:$4 sm:$0xff]   ;;  %v2715_v13 = vld [vmem:[#allocation6 + $0x1c8] ss:$12 sps:$4 sm:$0xff]  }
 0x179   :  { %1912 = vmatprep.subr.bf16.mxu0 %v2656_v14  ;;  %2362 = vmatprep.subr.bf16.mxu1 %v2693_v36  ;;  %v2719_v14 = vld [vmem:[#allocation6 + $0x1d0] ss:$12 sps:$4 sm:$0xff]   ;;  %v2735_v36 = vld [vmem:[#allocation6 + $0x228] ss:$12 sps:$4 sm:$0xff]  }
 0x17c   :  { %1913 = vmatpush1.bf16.msra.mxu0 %v2654_v15  ;;  %2363 = vmatpush3.bf16.msra.mxu1 %v2694_v39  ;;  %v2722_v15 = vld [vmem:[#allocation6 + $0x1e4] ss:$12 sps:$4 sm:$0xff]  }
 0x17d   :  { %1914 = vmatprep.subr.bf16.mxu0 %v2659_v16  ;;  %2364 = vmatprep.subr.bf16.mxu1 %v2698_v41  ;;  %v2723_v16 = vld [vmem:[#allocation6 + $0x2a8] ss:$12 sps:$4 sm:$0xff]   ;;  %v2740_v41 = vld [vmem:[#allocation6 + $0x240] ss:$12 sps:$4 sm:$0xff]  }
 0x180   :  { %1915 = vmatpush1.bf16.msra.mxu0 %v2657_v17  ;;  %2365 = vmatpush3.bf16.msra.mxu1 %v2699_v44  ;;  %v2720_v17 = vld [vmem:[#allocation6 + $0x1e0] ss:$12 sps:$4 sm:$0xff]   ;;  %v2745_v44 = vld [vmem:[#allocation6 + $0x25c] ss:$12 sps:$4 sm:$0xff]  }
 0x181   :  { %1916 = vmatprep.subr.bf16.mxu0 %v2662_v18  ;;  %2372 = vmatprep.subr.bf16.mxu1 %v2703_v46  ;;  %v2724_v18 = vld [vmem:[#allocation6 + $0x1e8] ss:$12 sps:$4 sm:$0xff]  }
 0x182   :  { %v2748_v46 = vld [vmem:[#allocation6 + $0x274] ss:$12 sps:$4 sm:$0xff]  }
 0x184   :  { %1917 = vmatpush1.bf16.msra.mxu0 %v2660_v19  ;;  %v2727_v19 = vld [vmem:[#allocation6 + $0x1fc] ss:$12 sps:$4 sm:$0xff]  }
 0x185   :  { %1918 = vmatprep.subr.bf16.mxu0 %v2667_v25  ;;  %v2728_v25 = vld [vmem:[#allocation6 + $0x2c0] ss:$12 sps:$4 sm:$0xff]  }
 0x188   :  { %1919 = vmatpush1.bf16.msra.mxu0 %v2665_v26  ;;  %v2725_v26 = vld [vmem:[#allocation6 + $0x1f8] ss:$12 sps:$4 sm:$0xff]  }
 0x189   :  { %1920 = vmatprep.subr.bf16.mxu0 %v2672_v27  ;;  %v2729_v27 = vld [vmem:[#allocation6 + $0x200] ss:$12 sps:$4 sm:$0xff]  }
 0x18c   :  { %1921 = vmatpush1.bf16.msra.mxu0 %v2670_v28  ;;  %v422_v28 = vrot.slane %v2971_v47, %v2963_v37  ;;  %v2746_v47 = vld [vmem:[#allocation6 + $0x270] ss:$12 sps:$4 sm:$0xff]  }
 0x18d   :  { %1922 = vmatprep.subr.bf16.mxu0 %v2677_v29  ;;  %v2732_v29 = vld [vmem:[#allocation6 + $0x214] ss:$12 sps:$4 sm:$0xff]  }
 0x190   :  { %1923 = vmatpush1.bf16.msra.mxu0 %v2675_v30  ;;  %v2733_v30 = vld [vmem:[#allocation6 + $0x2d8] ss:$12 sps:$4 sm:$0xff]  }
 0x191   :  { %1924 = vmatprep.subr.bf16.mxu0 %v2682_v31  ;;  %v2730_v31 = vld [vmem:[#allocation6 + $0x210] ss:$12 sps:$4 sm:$0xff]  }
 0x194   :  { %1925 = vmatpush1.bf16.msra.mxu0 %v2680_v32  ;;  %v2734_v32 = vld [vmem:[#allocation6 + $0x218] ss:$12 sps:$4 sm:$0xff]  }
 0x195   :  { %1926 = vmatprep.subr.bf16.mxu0 %v2687_v33 }
 0x198   :  { %1927 = vmatpush1.bf16.msra.mxu0 %v2685_v34  ;;  %v2737_v34 = vld [vmem:[#allocation6 + $0x22c] ss:$12 sps:$4 sm:$0xff]  }
 0x199   :  { %1928 = vmatprep.subr.bf16.mxu0 %v2692_v35  ;;  %v2738_v35 = vld [vmem:[#allocation6 + $0x2f0] ss:$12 sps:$4 sm:$0xff]  }
 0x19c   :  { %1929 = vmatpush1.bf16.msra.mxu0 %v2690_v38  ;;  %v2739_v38 = vld [vmem:[#allocation6 + $0x230] ss:$12 sps:$4 sm:$0xff]  }
 0x19d   :  { %1930 = vmatprep.subr.bf16.mxu0 %v2697_v40  ;;  %v2742_v40 = vld [vmem:[#allocation6 + $0x244] ss:$12 sps:$4 sm:$0xff]  }
 0x1a0   :  { %1931 = vmatpush1.bf16.msra.mxu0 %v2695_v42 }
 0x1a1   :  { %1941 = vmatprep.subr.bf16.mxu0 %v2702_v45  ;;  %v2743_v45 = vld [vmem:[#allocation6 + $0x258] ss:$12 sps:$4 sm:$0xff]  }
 0x236   :  { %v1146_v52 = vpop.f32.mrb[0].mxu0  ;;  %v2980_v53 = vpop.f32.mrb[8].mxu1 }
 0x237   :  { %v2394_v54 = vadd.f32 %v1146_v52, %v414_v48  ;;  %v1148_v23 = vpop.f32.mrb[1].mxu0  ;;  %v1230_v55 = vpop.f32.mrb[9].mxu1  ;;  %v2396_v33 = vadd.f32 %v2980_v53, %v422_v28  ;;  %v2751_v48 = vld [vmem:[#allocation6 + $0x28c] ss:$12 sps:$4 sm:$0xff]   ;;  %v2757_v53 = vld [vmem:[#allocation6 + $0x2bc] ss:$12 sps:$4 sm:$0xff]  }
 0x238   :  { %v2395_v56 = vadd.f32 %v1148_v23, %v418_v49  ;;  %v2397_v57 = vadd.f32 %v1230_v55, %v426_v50  ;;  %v1150_v58 = vpop.f32.mrb[2].mxu0  ;;  %v1232_v51 = vpop.f32.mrb[10].mxu1  ;;  %v2749_v49 = vld [vmem:[#allocation6 + $0x288] ss:$12 sps:$4 sm:$0xff]   ;;  %v2754_v50 = vld [vmem:[#allocation6 + $0x2a4] ss:$12 sps:$4 sm:$0xff]  }
 0x239   :  { %v1235_v59 = vmax.f32 %v2394_v54, 0.0  ;;  %v1151_v60 = vpop.f32.mrb[3].mxu0  ;;  %v1233_v61 = vpop.f32.mrb[11].mxu1  ;;  %v1237_v39 = vmax.f32 %v2396_v33, 0.0  ;;  %v2752_v52 = vld [vmem:[#allocation6 + $0x2a0] ss:$12 sps:$4 sm:$0xff]  }
 0x23a   :  { %v1236_v62 = vmax.f32 %v2395_v56, 0.0  ;;  %v1238_v63 = vmax.f32 %v2397_v57, 0.0  ;;  %v2755_v54 = vld [vmem:[#allocation6 + $0x2b8] ss:$12 sps:$4 sm:$0xff]   ;;  %v2760_v23 = vld [vmem:[#allocation6 + $0x2d4] ss:$12 sps:$4 sm:$0xff]  }
 0x23b   :  { %v1239_v2 = vpack.c.bf16 %v1235_v59, %v1235_v59  ;;  %v1241_v42 = vpack.c.bf16 %v1237_v39, %v1237_v39  ;;  %v2758_v55 = vld [vmem:[#allocation6 + $0x2d0] ss:$12 sps:$4 sm:$0xff]   ;;  %v2763_v56 = vld [vmem:[#allocation6 + $0x2ec] ss:$12 sps:$4 sm:$0xff]   ;;  %v2761_v57 = vld [vmem:[#allocation6 + $0x2e8] ss:$12 sps:$4 sm:$0xff]  }
 0x23c   :  { %v1240_v0 = vpack.c.bf16 %v1236_v62, %v1236_v62  ;;  %v1242_v4 = vpack.c.bf16 %v1238_v63, %v1238_v63  ;;  %v1371_v62 = vld [vmem:[%s3007_s6] sm:$0x7] }
 0x23d   :  { %v1384_v63 = vrot.slane %v1371_v62, %v2963_v37 }
 0x23e   :  { %1932 = vmatprep.mubr.bf16.mxu0 %v1240_v0  ;;  %2014 = vmatprep.mubr.bf16.mxu1 %v1240_v0 }
 0x23f   :  { %1933 = vmatmul.mubr.bf16.vlgmr.msra.gmra.mrb[4].mxu0 %v1239_v2  ;;  %2015 = vmatmul.mubr.bf16.vlgmr.msra.gmra.mrb[12].mxu1 %v1239_v2 }
 0x240   :  { %1942 = vmatpush1.bf16.msra.mxu0 %v2700_v1  ;;  %2373 = vmatpush3.bf16.msra.mxu1 %v2704_v21 }
 0x241   :  { %1973 = vmatprep.mubr.bf16.mxu0 %v1242_v4  ;;  %2054 = vmatprep.mubr.bf16.mxu1 %v1242_v4 }
 0x242   :  { %1943 = vmatprep.subr.bf16.mxu0 %v2707_v43  ;;  %2374 = vmatprep.subr.bf16.mxu1 %v2708_v3 }
 0x244   :  { %1944 = vmatpush1.bf16.msra.mxu0 %v2705_v5  ;;  %2375 = vmatpush3.bf16.msra.mxu1 %v2709_v6  ;;  %v2063_v5 = vand.u32 127, %v87_v20  ;;  %v1376_v6 = vrot.slane %v1371_v62, %v2942_v22 }
 0x245   :  { %1945 = vmatprep.subr.bf16.mxu0 %v2712_v7  ;;  %2376 = vmatprep.subr.bf16.mxu1 %v2713_v8  ;;  %v1380_v7 = vrot.slane %v1371_v62, %v2950_v24 }
 0x246   :  { %v2065_v8 = vadd.s32 256, %v2063_v5 }
 0x248   :  { %1946 = vmatpush1.bf16.msra.mxu0 %v2710_v9  ;;  %2377 = vmatpush3.bf16.msra.mxu1 %v2714_v10  ;;  %vm2068_vm1 = vcmp.lt.s32.totalorder %v2065_v8, 340  ;;  %vm2095_vm2 = vcmp.eq.s32.totalorder %v2065_v8, 340 }
 0x249   :  { %1947 = vmatprep.subr.bf16.mxu0 %v2717_v11  ;;  %2378 = vmatprep.subr.bf16.mxu1 %v2718_v12 }
 0x24c   :  { %1948 = vmatpush1.bf16.msra.mxu0 %v2715_v13  ;;  %2379 = vmatpush3.bf16.msra.mxu1 %v2719_v14 }
 0x24d   :  { %1949 = vmatprep.subr.bf16.mxu0 %v2722_v15  ;;  %2380 = vmatprep.subr.bf16.mxu1 %v2723_v16 }
 0x250   :  { %1950 = vmatpush1.bf16.msra.mxu0 %v2720_v17  ;;  %2381 = vmatpush3.bf16.msra.mxu1 %v2724_v18 }
 0x251   :  { %1951 = vmatprep.subr.bf16.mxu0 %v2727_v19  ;;  %2382 = vmatprep.subr.bf16.mxu1 %v2728_v25 }
 0x254   :  { %1952 = vmatpush1.bf16.msra.mxu0 %v2725_v26  ;;  %2383 = vmatpush3.bf16.msra.mxu1 %v2729_v27 }
 0x255   :  { %1953 = vmatprep.subr.bf16.mxu0 %v2732_v29  ;;  %2384 = vmatprep.subr.bf16.mxu1 %v2733_v30 }
 0x258   :  { %1954 = vmatpush1.bf16.msra.mxu0 %v2730_v31  ;;  %2385 = vmatpush3.bf16.msra.mxu1 %v2734_v32 }
 0x259   :  { %1955 = vmatprep.subr.bf16.mxu0 %v2737_v34  ;;  %2386 = vmatprep.subr.bf16.mxu1 %v2738_v35 }
 0x25c   :  { %1956 = vmatpush1.bf16.msra.mxu0 %v2735_v36  ;;  %2387 = vmatpush3.bf16.msra.mxu1 %v2739_v38 }
 0x25d   :  { %1957 = vmatprep.subr.bf16.mxu0 %v2742_v40 }
 0x25f   :  { %2055 = vmatmul.mubr.bf16.vlgmr.msra.gmra.mrb[16].mxu1 %v1241_v42 }
 0x260   :  { %1958 = vmatpush1.bf16.msra.mxu0 %v2740_v41 }
 0x261   :  { %1959 = vmatprep.subr.bf16.mxu0 %v2745_v44 }
 0x264   :  { %1960 = vmatpush1.bf16.msra.mxu0 %v2743_v45 }
 0x265   :  { %1961 = vmatprep.subr.bf16.mxu0 %v2748_v46 }
 0x268   :  { %1962 = vmatpush1.bf16.msra.mxu0 %v2746_v47 }
 0x269   :  { %1963 = vmatprep.subr.bf16.mxu0 %v2751_v48 }
 0x26c   :  { %1964 = vmatpush1.bf16.msra.mxu0 %v2749_v49 }
 0x26d   :  { %1965 = vmatprep.subr.bf16.mxu0 %v2754_v50 }
 0x270   :  { %1966 = vmatpush1.bf16.msra.mxu0 %v2752_v52 }
 0x271   :  { %1967 = vmatprep.subr.bf16.mxu0 %v2757_v53 }
 0x274   :  { %1968 = vmatpush1.bf16.msra.mxu0 %v2755_v54 }
 0x275   :  { %1969 = vmatprep.subr.bf16.mxu0 %v2760_v23 }
 0x278   :  { %1970 = vmatpush1.bf16.msra.mxu0 %v2758_v55 }
 0x279   :  { %1971 = vmatprep.subr.bf16.mxu0 %v2763_v56 }
 0x27c   :  { %1972 = vmatpush1.bf16.msra.mxu0 %v2761_v57 }
 0x27f   :  { %1974 = vmatmul.mubr.bf16.vlgmr.msra.gmra.mrb[4].mxu0 %v1241_v42 }
 0x312   :  { %v2366_v58 = vpop.f32.mrb[12].mxu1 }
 0x313   :  { %v2367_v51 = vpop.f32.mrb[13].mxu1 }
 0x314   :  { %v2368_v59 = vadd.f32 %v2367_v51, %v2366_v58  ;;  %v2369_v60 = vpop.f32.mrb[14].mxu1 }
 0x315   :  { %v2370_v61 = vpop.f32.mrb[15].mxu1 }
 0x316   :  { %v2017_v21 = vadd.f32 %v2368_v59, %v1384_v63 }
 0x332   :  { %v2388_v0 = vpop.f32.mrb[16].mxu1 }
 0x333   :  { %v2389_v1 = vpop.f32.mrb[17].mxu1 }
 0x334   :  { %v2390_v2 = vadd.f32 %v2389_v1, %v2388_v0  ;;  %v2391_v43 = vpop.f32.mrb[18].mxu1 }
 0x335   :  { %v2392_v3 = vpop.f32.mrb[19].mxu1 }
 0x336   :  { %v2057_v4 = vadd.f32 %v2390_v2, %v2017_v21 }
 0x338   :  { %v2071_v15 = vsel %vm2068_vm1, %v2057_v4, -inf }
 0x352   :  { %v1975_v9 = vpop.f32.mrb[4].mxu0 }
 0x353   :  { %v2398_v10 = vadd.f32 %v1975_v9, %v1376_v6  ;;  %v1977_v11 = vpop.f32.mrb[5].mxu0 }
 0x354   :  { %v2399_v12 = vadd.f32 %v1977_v11, %v1380_v7  ;;  %v1979_v13 = vpop.f32.mrb[6].mxu0 }
 0x355   :  { %v1980_v37 = vpop.f32.mrb[7].mxu0 }
 0x356   :  { %v2072_v14 = vmax.f32 %v2398_v10, %v2399_v12 }
 0x358   :  { %v2073_v16 = vmax.f32 %v2072_v14, %v2071_v15 }
 0x35a   :  { %2074 = vmax.xlane.f32.xlu0 %v2073_v16 }
 0x3e7   :  { %v2075_v17 = vpop.xlane.xlu0 %2074 }
 0x3e8   :  { %v2076_v18 = vsub.f32 %v2398_v10, %v2075_v17  ;;  %v2077_v19 = vsub.f32 %v2399_v12, %v2075_v17  ;;  %v2078_v20 = vsub.f32 %v2071_v15, %v2075_v17 }
 0x3ea   :  { %v2079_v25 = vmul.f32 1.442695, %v2076_v18  ;;  %v2081_v22 = vmul.f32 1.442695, %v2077_v19  ;;  %v2083_v26 = vmul.f32 1.442695, %v2078_v20 }
 0x3ec   :  { %2764 = vpow2.f32 %v2079_v25 }
 0x3ed   :  { %2766 = vpow2.f32 %v2081_v22 }
 0x3ee   :  { %2768 = vpow2.f32 %v2083_v26 }
 0x3f6   :  { %v2765_v24 = vpop.eup %2764 }
 0x3f7   :  { %v2767_v27 = vpop.eup %2766 }
 0x3f8   :  { %v2085_v28 = vadd.f32 %v2767_v27, %v2765_v24  ;;  %v2769_v29 = vpop.eup %2768 }
 0x3fa   :  { %v2086_v30 = vadd.f32 %v2769_v29, %v2085_v28 }
 0x3fc   :  { %2087 = vadd.xlane.f32.xlu0 %v2086_v30 }
 0x489   :  { %v2088_v31 = vpop.xlane.xlu0 %2087 }
 0x48a   :  { %2770 = vrcp.f32 %v2088_v31 }
 0x494   :  { %v2771_v32 = vpop.eup %2770 }
 0x495   :  { %v2090_v33 = vmul.f32 %v2771_v32, %v2765_v24  ;;  %v2091_v34 = vmul.f32 %v2771_v32, %v2767_v27  ;;  %v2092_v35 = vmul.f32 %v2771_v32, %v2769_v29 }
 0x497   :  { %v2098_v36 = vsel %vm2095_vm2, %v2057_v4, %v2092_v35  ;;  %2099 = vst [vmem:[%s3008_s7] sm:$0xff] %v2090_v33  ;;  %2100 = vst [vmem:[%s3008_s7 + $0x8] sm:$0xff] %v2091_v34 }
 0x498   :  { %2101 = vst [vmem:[%s3008_s7 + $0x10] sm:$0xff] %v2098_v36 }
 0x499   :  { %2106 = vsyncpa [#allocation3], 1 }
 0x49a   :  { %2107 = vsyncpa [#allocation5], 1 }

</bundles_post_ra>
